<compile_context>
chip_gen: v6e
topology: v6e:2x2x1
jax: 0.10.0
libtpu: 0.0.40
codegen_flags: <defaults>
</compile_context>

<pallas_src>
import functools

import jax
import jax.numpy as jnp
from jax import lax
from jax.experimental import pallas as pl
from jax.experimental.pallas import tpu as pltpu

LANE = 128                           # lane width; last dim of the 2-D slab
TARGET_BLOCK_BYTES = 4 * 1024 * 1024  # ~4 MiB per input per grid step
INNER_ROWS = 1024                    # rows per in-kernel sub-chunk
ACC_ROWS = 8                         # sublane rows of the resident accumulators
VMEM_LIMIT = 32 * 1024 * 1024        # safe on v5e / v6e / v7x


@functools.lru_cache(maxsize=None)
def _num_tensorcores():
    """Best-effort TensorCores per device (2 on v7x, 1 on v5e/v6e)."""
    try:
        info = pltpu.get_tpu_info()
        for name in ("num_cores", "num_tensorcores", "tensorcores_per_chip",
                     "num_cores_per_chip", "cores_per_chip"):
            v = getattr(info, name, None)
            if isinstance(v, int) and v >= 1:
                return v
    except Exception:
        pass
    try:
        v = getattr(jax.devices()[0], "num_cores", None)
        if isinstance(v, int) and v >= 1:
            return v
    except Exception:
        pass
    return 1


def _make_kernel(*, bm, w, acc_rows, inner_rows, s_per_chunk, n_blocks,
                 needs_skip):
    """Kernel closure over static tiling parameters.  Mask-free steady state:
    every block handed to the kernel is fully in-bounds."""
    n_inner = bm // inner_rows
    groups = inner_rows // acc_rows

    def _accum(o_ref, t_ref, sum_ref, cnt_ref, row0):
        o = o_ref[pl.ds(row0, inner_rows), :].astype(jnp.float32)
        t = t_ref[pl.ds(row0, inner_rows), :].astype(jnp.float32)
        valid = jnp.logical_not(jnp.isnan(t))
        diff = jnp.where(valid, o - t, 0.0)          # NaN never propagates
        sq = diff * diff
        vi = valid.astype(jnp.int32)
        if groups > 1:
            # Fold to the (acc_rows, w) accumulator shape with pure VPU adds
            # (no cross-lane movement); the one cross-lane reduction happens
            # in the wrapper.
            sq = sq.reshape(groups, acc_rows, w).sum(axis=0)
            vi = vi.reshape(groups, acc_rows, w).sum(axis=0)
        sum_ref[...] += sq
        cnt_ref[...] += vi

    def kernel(o_ref, t_ref, sum_ref, cnt_ref):
        c = pl.program_id(0)           # chunk (parallel) axis
        s = pl.program_id(1)           # reduction (arbitrary) axis

        @pl.when(s == 0)
        def _init():
            sum_ref[...] = jnp.zeros_like(sum_ref)
            cnt_ref[...] = jnp.zeros_like(cnt_ref)

        def _accumulate_block():
            if n_inner > 1:
                def body(i, carry):
                    row0 = pl.multiple_of(i * inner_rows, inner_rows)
                    _accum(o_ref, t_ref, sum_ref, cnt_ref, row0)
                    return carry
                lax.fori_loop(0, n_inner, body, 0)
            else:
                _accum(o_ref, t_ref, sum_ref, cnt_ref, 0)

        if needs_skip:
            # Only when nchunk == 2 and n_blocks is odd: the last step of the
            # second chunk points at a duplicated (clamped) block.  Skip its
            # accumulation with a scalar predicate (no per-element masking).
            @pl.when(c * s_per_chunk + s < n_blocks)
            def _():
                _accumulate_block()
        else:
            _accumulate_block()

    return kernel


@jax.jit
def mse_loss(output, target):
    """mean((output - target)^2) over entries where target is not NaN.
    Returns a float32 scalar (NaN if no valid entries)."""
    assert output.shape == target.shape
    n = output.size
    w = LANE

    o = output.reshape(-1)
    t = target.reshape(-1)

    # Sublane granularity so a (rows, 128) view is tileable for these dtypes.
    min_item = min(o.dtype.itemsize, t.dtype.itemsize)
    max_item = max(o.dtype.itemsize, t.dtype.itemsize)
    sub = max(8, 32 // min_item)

    rows_all = n // w

    # Byte-sized blocks (~4 MiB per input per step), kept a multiple of the
    # in-kernel sub-chunk so the inner loop tiles exactly.
    bm_target = max(INNER_ROWS,
                    (TARGET_BLOCK_BYTES // (w * max_item))
                    // INNER_ROWS * INNER_ROWS)
    if rows_all >= INNER_ROWS:
        bm = min(bm_target, (rows_all // INNER_ROWS) * INNER_ROWS)
        inner_rows = INNER_ROWS
    else:
        bm = (rows_all // sub) * sub
        inner_rows = bm

    n_blocks = rows_all // bm if bm > 0 else 0
    n_main = n_blocks * bm * w          # elements handled by the kernel

    # --- Pallas streaming reduction over the aligned prefix -----------------
    if n_blocks > 0:
        o2 = o[:n_main].reshape(n_blocks * bm, w)
        t2 = t[:n_main].reshape(n_blocks * bm, w)

        # 2 chunks (one per TensorCore) only where it can help: multi-core
        # chips (v7x) and more than one block.  v5e/v6e stay single-chunk.
        nchunk = 2 if (_num_tensorcores() >= 2 and n_blocks >= 2) else 1
        s_per_chunk = -(-n_blocks // nchunk)
        needs_skip = nchunk * s_per_chunk != n_blocks

        if needs_skip:
            last = n_blocks - 1
            in_idx = lambda c, s: (jnp.minimum(c * s_per_chunk + s, last), 0)
        else:
            in_idx = lambda c, s: (c * s_per_chunk + s, 0)
        out_idx = lambda c, s: (c, 0, 0)

        kernel = _make_kernel(bm=bm, w=w, acc_rows=ACC_ROWS,
                              inner_rows=inner_rows, s_per_chunk=s_per_chunk,
                              n_blocks=n_blocks, needs_skip=needs_skip)

        sums, cnts = pl.pallas_call(
            kernel,
            out_shape=(jax.ShapeDtypeStruct((nchunk, ACC_ROWS, w), jnp.float32),
                       jax.ShapeDtypeStruct((nchunk, ACC_ROWS, w), jnp.int32)),
            grid=(nchunk, s_per_chunk),
            in_specs=[pl.BlockSpec((bm, w), in_idx),
                      pl.BlockSpec((bm, w), in_idx)],
            out_specs=(pl.BlockSpec((None, ACC_ROWS, w), out_idx),
                       pl.BlockSpec((None, ACC_ROWS, w), out_idx)),
            compiler_params=pltpu.CompilerParams(
                dimension_semantics=("parallel", "arbitrary"),
                vmem_limit_bytes=VMEM_LIMIT),
            cost_estimate=pl.CostEstimate(
                flops=3 * n_main,
                transcendentals=0,
                bytes_accessed=n_main * (o.dtype.itemsize + t.dtype.itemsize)
                               + 2 * nchunk * ACC_ROWS * w * 4),
        )(o2, t2)

        kernel_sum = jnp.sum(sums)
        if n < 2 ** 31:
            kernel_cnt = jnp.sum(cnts).astype(jnp.float32)       # exact
        else:
            kernel_cnt = jnp.sum(cnts.astype(jnp.float32))
    else:
        kernel_sum = jnp.float32(0.0)
        kernel_cnt = jnp.float32(0.0)

    # --- ragged tail (< one block) in plain XLA: no padding copies ----------
    tail = n - n_main
    if tail > 0:
        ot = o[n_main:].astype(jnp.float32)
        tt = t[n_main:].astype(jnp.float32)
        tvalid = jnp.logical_not(jnp.isnan(tt))
        tdiff = jnp.where(tvalid, ot - tt, 0.0)
        tail_sum = jnp.sum(tdiff * tdiff)
        tail_cnt = jnp.sum(tvalid.astype(jnp.int32)).astype(jnp.float32)
    else:
        tail_sum = jnp.float32(0.0)
        tail_cnt = jnp.float32(0.0)

    total_sum = kernel_sum + tail_sum
    total_cnt = kernel_cnt + tail_cnt
    return total_sum / total_cnt


def _reference(output, target):
    o = output.astype(jnp.float32)
    t = target.astype(jnp.float32)
    valid = ~jnp.isnan(t)
    num = jnp.sum(jnp.where(valid, (o - t) ** 2, 0.0))
    return num / jnp.sum(valid)


if __name__ == "__main__":
    key = jax.random.PRNGKey(0)

    def make_case(key, shape, tgt_dtype=jnp.float32):
        k_out, k_tgt, k_nan = jax.random.split(key, 3)
        out = jax.random.normal(k_out, shape, dtype=jnp.float32)
        tgt = jax.random.normal(k_tgt, shape, dtype=jnp.float32)
        nan_mask = jax.random.uniform(k_nan, shape) < 0.2
        tgt = jnp.where(nan_mask, jnp.nan, tgt).astype(tgt_dtype)
        return out, tgt

    cases = [
        ((2, 4, 16, 16), jnp.float32),     # small NCHW, single small block
        ((3, 5, 7, 11), jnp.float32),      # ragged size -> XLA tail path
        ((8, 8, 128, 128), jnp.float32),   # exactly one full 4 MiB block
        ((8, 4, 256, 256), jnp.float32),   # multi-block streaming reduction
        ((12, 4, 256, 256), jnp.float32),  # odd block count (skip path on 2-TC chips)
        ((4, 8, 64, 64), jnp.bfloat16),    # mixed-precision target
    ]
    keys = jax.random.split(key, len(cases))
    for (shp, tdt), k in zip(cases, keys):
        out, tgt = make_case(k, shp, tdt)
        loss = mse_loss(out, tgt)
        jax.block_until_ready(loss)
        ref = _reference(out, tgt)
        assert jnp.allclose(loss, ref, rtol=1e-4, atol=1e-6), (shp, loss, ref)

    print("KERNEL_OK")
</pallas_src>

<mosaic_0001>
module attributes {stable_mosaic.version = 11 : i64} {
  func.func @kernel(%arg0: i32, %arg1: i32, %arg2: memref<16x128xf32, #tpu.memory_space<vmem>>, %arg3: memref<16x128xf32, #tpu.memory_space<vmem>>, %arg4: memref<1x8x128xf32, #tpu.memory_space<vmem>>, %arg5: memref<1x8x128xi32, #tpu.memory_space<vmem>>) attributes {dimension_semantics = [#tpu.dimension_semantics<parallel>, #tpu.dimension_semantics<arbitrary>], iteration_bounds = array<i64: 1, 1>, scalar_prefetch = 0 : i64, scratch_operands = 0 : i64, tpu.core_type = #tpu.core_type<tc>, window_params = [{transform_indices = @transform_0, window_bounds = array<i64: 16, 128>}, {transform_indices = @transform_1, window_bounds = array<i64: 16, 128>}, {transform_indices = @transform_2, window_bounds = array<i64: 1, 8, 128>}, {transform_indices = @transform_3, window_bounds = array<i64: 1, 8, 128>}]} {
    %c0_i32 = arith.constant 0 : i32
    %0 = arith.cmpi eq, %arg1, %c0_i32 : i32
    %1 = arith.extui %0 : i1 to i32
    %c0_i32_0 = arith.constant 0 : i32
    %2 = arith.cmpi ne, %1, %c0_i32_0 : i32
    scf.if %2 {
      %cst_19 = arith.constant 0.000000e+00 : f32
      %28 = vector.broadcast %cst_19 : f32 to vector<8x128xf32>
      %c0_20 = arith.constant 0 : index
      %c0_21 = arith.constant 0 : index
      %c0_22 = arith.constant 0 : index
      %29 = vector.load %arg4[%c0_20, %c0_21, %c0_22] : memref<1x8x128xf32, #tpu.memory_space<vmem>>, vector<1x8x128xf32>
      %30 = vector.shape_cast %29 : vector<1x8x128xf32> to vector<8x128xf32>
      %31 = vector.shape_cast %28 : vector<8x128xf32> to vector<1x8x128xf32>
      tpu.vector_store %arg4[%c0_20, %c0_21, %c0_22], %31 {strides = array<i32>} : memref<1x8x128xf32, #tpu.memory_space<vmem>>, vector<1x8x128xf32>,
      %c0_i32_23 = arith.constant 0 : i32
      %32 = vector.broadcast %c0_i32_23 : i32 to vector<8x128xi32>
      %c0_24 = arith.constant 0 : index
      %c0_25 = arith.constant 0 : index
      %c0_26 = arith.constant 0 : index
      %33 = vector.load %arg5[%c0_24, %c0_25, %c0_26] : memref<1x8x128xi32, #tpu.memory_space<vmem>>, vector<1x8x128xi32>
      %34 = vector.shape_cast %33 : vector<1x8x128xi32> to vector<8x128xi32>
      %35 = vector.shape_cast %32 : vector<8x128xi32> to vector<1x8x128xi32>
      tpu.vector_store %arg5[%c0_24, %c0_25, %c0_26], %35 {strides = array<i32>} : memref<1x8x128xi32, #tpu.memory_space<vmem>>, vector<1x8x128xi32>,
    } else {
    }
    %c0 = arith.constant 0 : index
    %c0_1 = arith.constant 0 : index
    %3 = vector.load %arg2[%c0, %c0_1] : memref<16x128xf32, #tpu.memory_space<vmem>>, vector<16x128xf32>
    %c0_2 = arith.constant 0 : index
    %c0_3 = arith.constant 0 : index
    %4 = vector.load %arg3[%c0_2, %c0_3] : memref<16x128xf32, #tpu.memory_space<vmem>>, vector<16x128xf32>
    %5 = arith.cmpf one, %4, %4 : vector<16x128xf32>
    %cst = arith.constant dense<true> : vector<16x128xi1>
    %6 = arith.xori %5, %cst : vector<16x128xi1>
    %7 = arith.subf %3, %4 : vector<16x128xf32>
    %cst_4 = arith.constant 0.000000e+00 : f32
    %8 = vector.broadcast %cst_4 : f32 to vector<16x128xf32>
    %9 = arith.select %6, %7, %8 : vector<16x128xi1>, vector<16x128xf32>
    %10 = arith.mulf %9, %9 : vector<16x128xf32>
    %11 = arith.extui %6 : vector<16x128xi1> to vector<16x128xi32>
    %12 = vector.shape_cast %10 : vector<16x128xf32> to vector<2x8x128xf32>
    %cst_5 = arith.constant dense<0.000000e+00> : vector<8x128xf32>
    %13 = vector.multi_reduction <add>, %12, %cst_5 [0] : vector<2x8x128xf32> to vector<8x128xf32>
    %14 = vector.shape_cast %11 : vector<16x128xi32> to vector<2x8x128xi32>
    %cst_6 = arith.constant dense<0> : vector<8x128xi32>
    %15 = vector.multi_reduction <add>, %14, %cst_6 [0] : vector<2x8x128xi32> to vector<8x128xi32>
    %c0_7 = arith.constant 0 : index
    %c0_8 = arith.constant 0 : index
    %c0_9 = arith.constant 0 : index
    %16 = vector.load %arg4[%c0_7, %c0_8, %c0_9] : memref<1x8x128xf32, #tpu.memory_space<vmem>>, vector<1x8x128xf32>
    %17 = vector.shape_cast %16 : vector<1x8x128xf32> to vector<8x128xf32>
    %18 = arith.addf %17, %13 : vector<8x128xf32>
    %c0_10 = arith.constant 0 : index
    %c0_11 = arith.constant 0 : index
    %c0_12 = arith.constant 0 : index
    %19 = vector.load %arg4[%c0_10, %c0_11, %c0_12] : memref<1x8x128xf32, #tpu.memory_space<vmem>>, vector<1x8x128xf32>
    %20 = vector.shape_cast %19 : vector<1x8x128xf32> to vector<8x128xf32>
    %21 = vector.shape_cast %18 : vector<8x128xf32> to vector<1x8x128xf32>
    tpu.vector_store %arg4[%c0_10, %c0_11, %c0_12], %21 {strides = array<i32>} : memref<1x8x128xf32, #tpu.memory_space<vmem>>, vector<1x8x128xf32>,
    %c0_13 = arith.constant 0 : index
    %c0_14 = arith.constant 0 : index
    %c0_15 = arith.constant 0 : index
    %22 = vector.load %arg5[%c0_13, %c0_14, %c0_15] : memref<1x8x128xi32, #tpu.memory_space<vmem>>, vector<1x8x128xi32>
    %23 = vector.shape_cast %22 : vector<1x8x128xi32> to vector<8x128xi32>
    %24 = arith.addi %23, %15 : vector<8x128xi32>
    %c0_16 = arith.constant 0 : index
    %c0_17 = arith.constant 0 : index
    %c0_18 = arith.constant 0 : index
    %25 = vector.load %arg5[%c0_16, %c0_17, %c0_18] : memref<1x8x128xi32, #tpu.memory_space<vmem>>, vector<1x8x128xi32>
    %26 = vector.shape_cast %25 : vector<1x8x128xi32> to vector<8x128xi32>
    %27 = vector.shape_cast %24 : vector<8x128xi32> to vector<1x8x128xi32>
    tpu.vector_store %arg5[%c0_16, %c0_17, %c0_18], %27 {strides = array<i32>} : memref<1x8x128xi32, #tpu.memory_space<vmem>>, vector<1x8x128xi32>,
    return
  }
  func.func @transform_0(%arg0: i32, %arg1: i32) -> (i32, i32) {
    %c1_i32 = arith.constant 1 : i32
    %0 = arith.muli %arg0, %c1_i32 : i32
    %1 = arith.addi %0, %arg1 : i32
    %c0_i32 = arith.constant 0 : i32
    %c0_i32_0 = arith.constant 0 : i32
    return %1, %c0_i32 : i32, i32
  }
  func.func @transform_1(%arg0: i32, %arg1: i32) -> (i32, i32) {
    %c1_i32 = arith.constant 1 : i32
    %0 = arith.muli %arg0, %c1_i32 : i32
    %1 = arith.addi %0, %arg1 : i32
    %c0_i32 = arith.constant 0 : i32
    %c0_i32_0 = arith.constant 0 : i32
    return %1, %c0_i32 : i32, i32
  }
  func.func @transform_2(%arg0: i32, %arg1: i32) -> (i32, i32, i32) {
    %c0_i32 = arith.constant 0 : i32
    %c0_i32_0 = arith.constant 0 : i32
    %c0_i32_1 = arith.constant 0 : i32
    return %arg0, %c0_i32, %c0_i32_0 : i32, i32, i32
  }
  func.func @transform_3(%arg0: i32, %arg1: i32) -> (i32, i32, i32) {
    %c0_i32 = arith.constant 0 : i32
    %c0_i32_0 = arith.constant 0 : i32
    %c0_i32_1 = arith.constant 0 : i32
    return %arg0, %c0_i32, %c0_i32_0 : i32, i32, i32
  }
}

</mosaic_0001>

<bundles_post_ra>
// kernel: mse_loss.1
= control target key start
LH: loop header
LB: loop body
LE: loop exit
PB: predicated region body
PF: predicated region fallthrough
CT: control target
= control target key end

     0   :  { %vm110_vm2 = vmmov 1   ;;  %v111_v7 = vmov 0   ;;  %s150_s0 = inlined_call_operand.vmem [shape: f32[16,128], index: 0, kind: input, shape index: {}]   ;;  %s151_s1 = inlined_call_operand.vmem [shape: f32[16,128], index: 1, kind: input, shape index: {}]   ;;  %s152_s3 = inlined_call_operand.vmem [shape: s32[1,8,128], index: 3, kind: output, shape index: {1}]   ;;  %s153_s2 = inlined_call_operand.vmem [shape: f32[1,8,128], index: 2, kind: output, shape index: {0}]  }
   0x1   :  { %v63_v0 = vld [vmem:[%s150_s0] sm:$0xff]  ;;  %v64_v1 = vld [vmem:[%s150_s0 + $0x8] sm:$0xff] }
   0x2   :  { %v65_v2 = vld [vmem:[%s151_s1] sm:$0xff]  ;;  %v66_v3 = vld [vmem:[%s151_s1 + $0x8] sm:$0xff] }
   0x3   :  { %vm67_vm0 = vcmp.ne.f32.partialorder %v65_v2, %v65_v2  ;;  %v71_v4 = vsub.f32 %v63_v0, %v65_v2  ;;  %vm68_vm1 = vcmp.ne.f32.partialorder %v66_v3, %v66_v3  ;;  %v72_v5 = vsub.f32 %v64_v1, %v66_v3 }
   0x4   :  { %vm69_vm3 = vmxor %vm67_vm0, %vm110_vm2 }
   0x5   :  { %vm70_vm4 = vmxor %vm68_vm1, %vm110_vm2  ;;  %v73_v6 = vsel %vm69_vm3, %v71_v4, 0.0  ;;  %v77_v8 = vsel %vm69_vm3, 1, %v111_v7 }
   0x6   :  { %v74_v9 = vsel %vm70_vm4, %v72_v5, 0.0  ;;  %v75_v10 = vmul.f32 %v73_v6, %v73_v6  ;;  %v78_v11 = vsel %vm70_vm4, 1, %v111_v7 }
   0x7   :  { %v76_v12 = vmul.f32 %v74_v9, %v74_v9  ;;  %v80_v13 = vadd.s32 %v78_v11, %v77_v8 }
   0x9   :  { %v79_v14 = vadd.f32 %v76_v12, %v75_v10  ;;  %86 = vst [vmem:[%s152_s3] sm:$0xff] %v80_v13 }
   0xb   :  { %83 = vst [vmem:[%s153_s2] sm:$0xff] %v79_v14 }

</bundles_post_ra>
